<compile_context>
chip_gen: v6e
topology: v6e:2x2x1
jax: 0.10.0
libtpu: 0.0.40
codegen_flags: <defaults>
</compile_context>

<pallas_src>
import math
from functools import partial

import jax
import jax.numpy as jnp
from jax import lax
from jax.experimental import pallas as pl
from jax.experimental.pallas import tpu as pltpu


def _round_up(n, m):
    return ((n + m - 1) // m) * m


def _vmem_capacity_bytes():
    """Physical VMEM per TensorCore; conservative (v7x) fallback if unknown."""
    try:
        return int(pltpu.get_tpu_info().vmem_capacity_bytes)
    except Exception:
        return 64 << 20


def _res_block_kernel(x_ref, gamma_ref, beta_ref, w1_ref, b1_ref, w2_ref, b2_ref,
                      o_ref, xn_ref, acc_ref, *, c_real, compute_dtype,
                      approximate_gelu):
    k = pl.program_id(1)

    @pl.when(k == 0)
    def _():
        # LayerNorm over the channel dim, computed once per row tile and kept
        # resident in f32 scratch for all K chunks.
        x = x_ref[...].astype(jnp.float32)
        cp = x.shape[-1]
        inv_c = 1.0 / float(c_real)
        mean = jnp.sum(x, axis=-1, keepdims=True) * inv_c        # pads are zero
        centered = x - mean
        if c_real != cp:
            # Zero padded lanes so they don't pollute the variance.
            mask = lax.broadcasted_iota(jnp.int32, (1, cp), 1) < c_real
            centered = jnp.where(mask, centered, 0.0)
        var = jnp.sum(centered * centered, axis=-1, keepdims=True) * inv_c
        xn_ref[...] = (centered * lax.rsqrt(var + 1e-5) * gamma_ref[...]
                       + beta_ref[...])
        acc_ref[...] = jnp.zeros_like(acc_ref)

    # K-chunk of proj: h_k = GELU(xn @ W1[:, k] + b1[k]);  acc += h_k @ W2[k, :]
    h = jnp.dot(xn_ref[...].astype(compute_dtype), w1_ref[...],
                preferred_element_type=jnp.float32) + b1_ref[...]
    if approximate_gelu:
        h = jax.nn.gelu(h, approximate=True)                     # tanh -> EUP
    else:
        h = 0.5 * h * (1.0 + lax.erf(h * (1.0 / math.sqrt(2.0))))  # torch default
    acc_ref[...] += jnp.dot(h.astype(compute_dtype), w2_ref[...],
                            preferred_element_type=jnp.float32)

    @pl.when(k == pl.num_programs(1) - 1)
    def _():
        o_ref[...] = (xn_ref[...] + acc_ref[...] + b2_ref[...]).astype(o_ref.dtype)


def prepare_params(params, *, compute_dtype=jnp.bfloat16, lane_multiple=256,
                   max_resident_weight_bytes=16 << 20,
                   weight_chunk_budget_bytes=16 << 20):
    """One-time cast/pad of SimpleResBlock parameters (do NOT call per forward).

    Weights are stored (in, out) so the kernel computes y = x @ W + b.
    Returns padded device arrays plus static tiling metadata.
    """
    gamma = jnp.asarray(params["gamma"], jnp.float32)
    C = gamma.shape[-1]
    Cp = _round_up(C, lane_multiple)
    w_item = jnp.dtype(compute_dtype).itemsize

    # K/N chunk width for weight streaming.  Small C: keep both full weights
    # resident (single-buffered, fetched once).  Large C: stream (Cp,tn)/(tn,Cp)
    # chunks, double-buffered, so resident weights never exceed the budget and
    # the kernel fits v7x's 64 MiB VMEM.
    if 2 * Cp * Cp * w_item <= max_resident_weight_bytes:
        tn = Cp
    else:
        tn = weight_chunk_budget_bytes // (4 * Cp * w_item)   # 2 weights x 2 bufs
        tn = max(256, (tn // 256) * 256)
        tn = min(tn, Cp)
    Kp = _round_up(Cp, tn)
    num_k = Kp // tn

    def vec(v, n):
        v = jnp.asarray(v, jnp.float32).reshape(1, C)
        return jnp.pad(v, ((0, 0), (0, n - C))) if n != C else v

    def mat(w, rows, cols):
        w = jnp.asarray(w, compute_dtype)
        if w.shape != (rows, cols):
            w = jnp.pad(w, ((0, rows - C), (0, cols - C)))
        return w

    return dict(
        gamma=vec(params["gamma"], Cp), beta=vec(params["beta"], Cp),
        b1=vec(params["b1"], Kp), b2=vec(params["b2"], Cp),
        w1=mat(params["w1"], Cp, Kp), w2=mat(params["w2"], Kp, Cp),
        C=C, Cp=Cp, Kp=Kp, tn=tn, num_k=num_k, compute_dtype=compute_dtype)


def simple_res_block(x, prep, *, tile_rows=None, approximate_gelu=False):
    """x: (..., C) float array. prep: output of prepare_params()."""
    C, Cp, Kp = prep["C"], prep["Cp"], prep["Kp"]
    tn, num_k = prep["tn"], prep["num_k"]
    compute_dtype = prep["compute_dtype"]
    assert x.shape[-1] == C

    orig_shape = x.shape
    x2d = x.reshape(-1, C)
    T = x2d.shape[0]
    T8 = _round_up(T, 8)

    # Row tile: target ~2 MiB f32 x tile, clamp to [256, 1024] rows, never
    # larger than the (8-padded) token count.  Partial trailing tile allowed.
    if tile_rows is None:
        tm = max(256, min(1024, ((2 << 20) // (Cp * 4)) // 8 * 8))
    else:
        tm = _round_up(int(tile_rows), 8)
    tm = min(tm, T8)

    if (T8, Cp) != (T, C):
        x2d = jnp.pad(x2d, ((0, T8 - T), (0, Cp - C)))

    grid_rows = pl.cdiv(T8, tm)
    grid = (grid_rows, num_k)

    single = pl.Buffered(1)
    if num_k == 1:  # constant-index weights: don't double their VMEM footprint
        w1_spec = pl.BlockSpec((Cp, tn), lambda i, n: (0, n), pipeline_mode=single)
        b1_spec = pl.BlockSpec((1, tn), lambda i, n: (0, n), pipeline_mode=single)
        w2_spec = pl.BlockSpec((tn, Cp), lambda i, n: (n, 0), pipeline_mode=single)
    else:           # streaming chunks: default double-buffering hides the DMA
        w1_spec = pl.BlockSpec((Cp, tn), lambda i, n: (0, n))
        b1_spec = pl.BlockSpec((1, tn), lambda i, n: (0, n))
        w2_spec = pl.BlockSpec((tn, Cp), lambda i, n: (n, 0))
    vec_spec = pl.BlockSpec((1, Cp), lambda i, n: (0, 0), pipeline_mode=single)

    io_item = x2d.dtype.itemsize
    w_item = jnp.dtype(compute_dtype).itemsize
    wbufs = 1 if num_k == 1 else 2
    vmem_est = (4 * tm * Cp * io_item                     # x + out tiles (2 bufs)
                + wbufs * 2 * Cp * tn * w_item            # w1/w2 chunks
                + (wbufs * tn + 3 * Cp) * 4               # b1 chunk, gamma/beta/b2
                + 2 * tm * Cp * 4                         # xn + acc scratch (f32)
                + tm * tn * 4 + tm * (Cp + tn) * w_item)  # live temporaries
    capacity = _vmem_capacity_bytes()
    vmem_limit = int(min(capacity - (8 << 20), max(32 << 20, vmem_est + (8 << 20))))
    vmem_limit = max(vmem_limit, 16 << 20)

    cost = pl.CostEstimate(
        flops=4 * T * C * C,
        transcendentals=T * C,
        bytes_accessed=(2 * T * Cp * io_item
                        + 2 * Cp * Kp * w_item * (1 if num_k == 1 else grid_rows)))

    out = pl.pallas_call(
        partial(_res_block_kernel, c_real=C, compute_dtype=compute_dtype,
                approximate_gelu=approximate_gelu),
        out_shape=jax.ShapeDtypeStruct((T8, Cp), x2d.dtype),
        grid_spec=pltpu.PrefetchScalarGridSpec(
            num_scalar_prefetch=0,
            grid=grid,
            in_specs=[
                pl.BlockSpec((tm, Cp), lambda i, n: (i, 0)),   # x row tile
                vec_spec,   # gamma
                vec_spec,   # beta
                w1_spec,    # w1 K-chunk
                b1_spec,    # b1 K-chunk
                w2_spec,    # w2 K-chunk
                vec_spec,   # b2
            ],
            out_specs=pl.BlockSpec((tm, Cp), lambda i, n: (i, 0)),
            scratch_shapes=[pltpu.VMEM((tm, Cp), jnp.float32),   # xn (LayerNorm)
                            pltpu.VMEM((tm, Cp), jnp.float32)],  # acc (proj sum)
        ),
        compiler_params=pltpu.CompilerParams(
            dimension_semantics=("parallel", "arbitrary"),
            vmem_limit_bytes=vmem_limit),
        cost_estimate=cost,
    )(x2d, prep["gamma"], prep["beta"], prep["w1"], prep["b1"], prep["w2"],
      prep["b2"])

    if (T8, Cp) != (T, C):
        out = out[:T, :C]
    return out.reshape(orig_shape)


def init_params(key, channels):
    """Deterministic init matching the shapes in SimpleResBlock.__init__."""
    k1, k2, k3, k4 = jax.random.split(key, 4)
    bound = 1.0 / math.sqrt(channels)
    gamma = jnp.ones((channels,), jnp.float32)      # nn.LayerNorm defaults
    beta = jnp.zeros((channels,), jnp.float32)
    # nn.Linear(channels, channels): stored transposed as (in, out)
    w1 = jax.random.uniform(k1, (channels, channels), jnp.float32, -bound, bound)
    b1 = jax.random.uniform(k2, (channels,), jnp.float32, -bound, bound)
    w2 = jax.random.uniform(k3, (channels, channels), jnp.float32, -bound, bound)
    b2 = jax.random.uniform(k4, (channels,), jnp.float32, -bound, bound)
    return dict(gamma=gamma, beta=beta, w1=w1, b1=b1, w2=w2, b2=b2)


def _reference(x, p):
    """Pure-JAX f32 reference for correctness check."""
    xf = x.astype(jnp.float32)
    mean = jnp.mean(xf, axis=-1, keepdims=True)
    var = jnp.mean((xf - mean) ** 2, axis=-1, keepdims=True)
    xn = (xf - mean) * lax.rsqrt(var + 1e-5) * p["gamma"] + p["beta"]
    h = xn @ p["w1"] + p["b1"]
    h = 0.5 * h * (1.0 + lax.erf(h / math.sqrt(2.0)))
    y = h @ p["w2"] + p["b2"]
    return (xn + y).astype(x.dtype)


if __name__ == "__main__":
    key = jax.random.PRNGKey(0)
    k_x1, k_p1, k_x2, k_p2, k_x3, k_p3 = jax.random.split(key, 6)

    # Case 1: tiny, lane-sparse channels (exercises C padding + LN mask path).
    x1 = jax.random.normal(k_x1, (2, 8, 32), jnp.float32)
    p1 = init_params(k_p1, 32)
    prep1 = prepare_params(p1)
    out1 = jax.block_until_ready(simple_res_block(x1, prep1))
    ref1 = _reference(x1, p1)
    assert out1.shape == x1.shape and out1.dtype == x1.dtype
    assert jnp.allclose(out1, ref1, atol=5e-2, rtol=5e-2), "case1 mismatch"

    # Case 2: 256-aligned channels, resident-weight (num_k == 1) path, no padding.
    x2 = jax.random.normal(k_x2, (2, 128, 256), jnp.float32)
    p2 = init_params(k_p2, 256)
    prep2 = prepare_params(p2)
    out2 = jax.block_until_ready(simple_res_block(x2, prep2))
    ref2 = _reference(x2, p2)
    assert out2.shape == x2.shape and out2.dtype == x2.dtype
    assert jnp.allclose(out2, ref2, atol=5e-2, rtol=5e-2), "case2 mismatch"

    # Case 3: force the large-C weight-streaming path (num_k > 1) and a partial
    # trailing row tile (T=600 with tm=256).
    x3 = jax.random.normal(k_x3, (1, 600, 512), jnp.float32)
    p3 = init_params(k_p3, 512)
    prep3 = prepare_params(p3, max_resident_weight_bytes=0,
                           weight_chunk_budget_bytes=1 << 20)
    assert prep3["num_k"] > 1
    out3 = jax.block_until_ready(simple_res_block(x3, prep3, tile_rows=256))
    ref3 = _reference(x3, p3)
    assert out3.shape == x3.shape and out3.dtype == x3.dtype
    assert jnp.allclose(out3, ref3, atol=5e-2, rtol=5e-2), "case3 mismatch"

    print("KERNEL_OK")
</pallas_src>

<mosaic_0001>
module attributes {stable_mosaic.version = 11 : i64} {
  func.func @_res_block_kernel(%arg0: i32, %arg1: i32, %arg2: memref<16x256xf32, #tpu.memory_space<vmem>>, %arg3: memref<1x256xf32, #tpu.memory_space<vmem>>, %arg4: memref<1x256xf32, #tpu.memory_space<vmem>>, %arg5: memref<256x256xbf16, #tpu.memory_space<vmem>>, %arg6: memref<1x256xf32, #tpu.memory_space<vmem>>, %arg7: memref<256x256xbf16, #tpu.memory_space<vmem>>, %arg8: memref<1x256xf32, #tpu.memory_space<vmem>>, %arg9: memref<16x256xf32, #tpu.memory_space<vmem>>, %arg10: memref<16x256xf32, #tpu.memory_space<vmem>>, %arg11: memref<16x256xf32, #tpu.memory_space<vmem>>) attributes {dimension_semantics = [#tpu.dimension_semantics<parallel>, #tpu.dimension_semantics<arbitrary>], iteration_bounds = array<i64: 1, 1>, scalar_prefetch = 0 : i64, scratch_operands = 2 : i64, tpu.core_type = #tpu.core_type<tc>, window_params = [{transform_indices = @transform_0, window_bounds = array<i64: 16, 256>}, {pipeline_mode = #tpu.pipeline_mode<synchronous>, transform_indices = @transform_1, window_bounds = array<i64: 1, 256>}, {pipeline_mode = #tpu.pipeline_mode<synchronous>, transform_indices = @transform_2, window_bounds = array<i64: 1, 256>}, {pipeline_mode = #tpu.pipeline_mode<synchronous>, transform_indices = @transform_3, window_bounds = array<i64: 256, 256>}, {pipeline_mode = #tpu.pipeline_mode<synchronous>, transform_indices = @transform_4, window_bounds = array<i64: 1, 256>}, {pipeline_mode = #tpu.pipeline_mode<synchronous>, transform_indices = @transform_5, window_bounds = array<i64: 256, 256>}, {pipeline_mode = #tpu.pipeline_mode<synchronous>, transform_indices = @transform_6, window_bounds = array<i64: 1, 256>}, {transform_indices = @transform_7, window_bounds = array<i64: 16, 256>}]} {
    %c0_i32 = arith.constant 0 : i32
    %0 = arith.cmpi eq, %arg1, %c0_i32 : i32
    %1 = arith.extui %0 : i1 to i32
    %c0_i32_0 = arith.constant 0 : i32
    %2 = arith.cmpi ne, %1, %c0_i32_0 : i32
    scf.if %2 {
      %c0_18 = arith.constant 0 : index
      %c0_19 = arith.constant 0 : index
      %27 = vector.load %arg2[%c0_18, %c0_19] : memref<16x256xf32, #tpu.memory_space<vmem>>, vector<16x256xf32>
      %cst_20 = arith.constant dense<0.000000e+00> : vector<16xf32>
      %28 = vector.multi_reduction <add>, %27, %cst_20 [1] : vector<16x256xf32> to vector<16xf32>
      %29 = vector.shape_cast %28 : vector<16xf32> to vector<16x1xf32>
      %cst_21 = arith.constant 3.125000e-02 : f32
      %30 = vector.broadcast %cst_21 : f32 to vector<16x1xf32>
      %31 = arith.mulf %29, %30 : vector<16x1xf32>
      %32 = vector.broadcast %31 : vector<16x1xf32> to vector<16x256xf32>
      %33 = arith.subf %27, %32 : vector<16x256xf32>
      %34 = tpu.iota {dimensions = array<i32: 1>} : vector<1x256xi32>
      %c32_i32 = arith.constant 32 : i32
      %35 = vector.broadcast %c32_i32 : i32 to vector<1x256xi32>
      %36 = arith.cmpi slt, %34, %35 : vector<1x256xi32>
      %cst_22 = arith.constant 0.000000e+00 : f32
      %37 = vector.shape_cast %36 : vector<1x256xi1> to vector<1x256xi1>
      %38 = vector.broadcast %37 : vector<1x256xi1> to vector<16x256xi1>
      %39 = vector.broadcast %cst_22 : f32 to vector<16x256xf32>
      %40 = arith.select %38, %33, %39 : vector<16x256xi1>, vector<16x256xf32>
      %41 = arith.mulf %40, %40 : vector<16x256xf32>
      %cst_23 = arith.constant dense<0.000000e+00> : vector<16xf32>
      %42 = vector.multi_reduction <add>, %41, %cst_23 [1] : vector<16x256xf32> to vector<16xf32>
      %43 = vector.shape_cast %42 : vector<16xf32> to vector<16x1xf32>
      %cst_24 = arith.constant 3.125000e-02 : f32
      %44 = vector.broadcast %cst_24 : f32 to vector<16x1xf32>
      %45 = arith.mulf %43, %44 : vector<16x1xf32>
      %cst_25 = arith.constant 9.99999974E-6 : f32
      %46 = vector.broadcast %cst_25 : f32 to vector<16x1xf32>
      %47 = arith.addf %45, %46 : vector<16x1xf32>
      %48 = math.rsqrt %47 : vector<16x1xf32>
      %49 = vector.broadcast %48 : vector<16x1xf32> to vector<16x256xf32>
      %50 = arith.mulf %40, %49 : vector<16x256xf32>
      %c0_26 = arith.constant 0 : index
      %c0_27 = arith.constant 0 : index
      %51 = vector.load %arg3[%c0_26, %c0_27] : memref<1x256xf32, #tpu.memory_space<vmem>>, vector<1x256xf32>
      %52 = vector.broadcast %51 : vector<1x256xf32> to vector<16x256xf32>
      %53 = arith.mulf %50, %52 : vector<16x256xf32>
      %c0_28 = arith.constant 0 : index
      %c0_29 = arith.constant 0 : index
      %54 = vector.load %arg4[%c0_28, %c0_29] : memref<1x256xf32, #tpu.memory_space<vmem>>, vector<1x256xf32>
      %55 = vector.broadcast %54 : vector<1x256xf32> to vector<16x256xf32>
      %56 = arith.addf %53, %55 : vector<16x256xf32>
      %c0_30 = arith.constant 0 : index
      %c0_31 = arith.constant 0 : index
      %57 = vector.load %arg10[%c0_30, %c0_31] : memref<16x256xf32, #tpu.memory_space<vmem>>, vector<16x256xf32>
      tpu.vector_store %arg10[%c0_30, %c0_31], %56 {strides = array<i32>} : memref<16x256xf32, #tpu.memory_space<vmem>>, vector<16x256xf32>,
      %cst_32 = arith.constant 0.000000e+00 : f32
      %58 = vector.broadcast %cst_32 : f32 to vector<16x256xf32>
      %c0_33 = arith.constant 0 : index
      %c0_34 = arith.constant 0 : index
      %59 = vector.load %arg11[%c0_33, %c0_34] : memref<16x256xf32, #tpu.memory_space<vmem>>, vector<16x256xf32>
      tpu.vector_store %arg11[%c0_33, %c0_34], %58 {strides = array<i32>} : memref<16x256xf32, #tpu.memory_space<vmem>>, vector<16x256xf32>,
    } else {
    }
    %c0 = arith.constant 0 : index
    %c0_1 = arith.constant 0 : index
    %3 = vector.load %arg10[%c0, %c0_1] : memref<16x256xf32, #tpu.memory_space<vmem>>, vector<16x256xf32>
    %4 = arith.truncf %3 : vector<16x256xf32> to vector<16x256xbf16>
    %c0_2 = arith.constant 0 : index
    %c0_3 = arith.constant 0 : index
    %5 = vector.load %arg5[%c0_2, %c0_3] : memref<256x256xbf16, #tpu.memory_space<vmem>>, vector<256x256xbf16>
    %cst = arith.constant dense<0.000000e+00> : vector<16x256xf32>
    %6 = tpu.matmul %4, %5, %cst {dimension_numbers = #tpu.dot_dimension_numbers<[1], [0], [0], [1], [0, 0, 1, 1], [], []>} : vector<16x256xbf16>, vector<256x256xbf16>, vector<16x256xf32> -> vector<16x256xf32>
    %c0_4 = arith.constant 0 : index
    %c0_5 = arith.constant 0 : index
    %7 = vector.load %arg6[%c0_4, %c0_5] : memref<1x256xf32, #tpu.memory_space<vmem>>, vector<1x256xf32>
    %8 = vector.broadcast %7 : vector<1x256xf32> to vector<16x256xf32>
    %9 = arith.addf %6, %8 : vector<16x256xf32>
    %cst_6 = arith.constant 5.000000e-01 : f32
    %10 = vector.broadcast %cst_6 : f32 to vector<16x256xf32>
    %11 = arith.mulf %10, %9 : vector<16x256xf32>
    %cst_7 = arith.constant 0.707106769 : f32
    %12 = vector.broadcast %cst_7 : f32 to vector<16x256xf32>
    %13 = arith.mulf %9, %12 : vector<16x256xf32>
    %14 = math.erf %13 : vector<16x256xf32>
    %cst_8 = arith.constant 1.000000e+00 : f32
    %15 = vector.broadcast %cst_8 : f32 to vector<16x256xf32>
    %16 = arith.addf %15, %14 : vector<16x256xf32>
    %17 = arith.mulf %11, %16 : vector<16x256xf32>
    %c0_9 = arith.constant 0 : index
    %c0_10 = arith.constant 0 : index
    %18 = vector.load %arg11[%c0_9, %c0_10] : memref<16x256xf32, #tpu.memory_space<vmem>>, vector<16x256xf32>
    %19 = arith.truncf %17 : vector<16x256xf32> to vector<16x256xbf16>
    %c0_11 = arith.constant 0 : index
    %c0_12 = arith.constant 0 : index
    %20 = vector.load %arg7[%c0_11, %c0_12] : memref<256x256xbf16, #tpu.memory_space<vmem>>, vector<256x256xbf16>
    %cst_13 = arith.constant dense<0.000000e+00> : vector<16x256xf32>
    %21 = tpu.matmul %19, %20, %cst_13 {dimension_numbers = #tpu.dot_dimension_numbers<[1], [0], [0], [1], [0, 0, 1, 1], [], []>} : vector<16x256xbf16>, vector<256x256xbf16>, vector<16x256xf32> -> vector<16x256xf32>
    %22 = arith.addf %18, %21 : vector<16x256xf32>
    %c0_14 = arith.constant 0 : index
    %c0_15 = arith.constant 0 : index
    %23 = vector.load %arg11[%c0_14, %c0_15] : memref<16x256xf32, #tpu.memory_space<vmem>>, vector<16x256xf32>
    tpu.vector_store %arg11[%c0_14, %c0_15], %22 {strides = array<i32>} : memref<16x256xf32, #tpu.memory_space<vmem>>, vector<16x256xf32>,
    %c0_i32_16 = arith.constant 0 : i32
    %24 = arith.cmpi eq, %arg1, %c0_i32_16 : i32
    %25 = arith.extui %24 : i1 to i32
    %c0_i32_17 = arith.constant 0 : i32
    %26 = arith.cmpi ne, %25, %c0_i32_17 : i32
    scf.if %26 {
      %c0_18 = arith.constant 0 : index
      %c0_19 = arith.constant 0 : index
      %27 = vector.load %arg10[%c0_18, %c0_19] : memref<16x256xf32, #tpu.memory_space<vmem>>, vector<16x256xf32>
      %c0_20 = arith.constant 0 : index
      %c0_21 = arith.constant 0 : index
      %28 = vector.load %arg11[%c0_20, %c0_21] : memref<16x256xf32, #tpu.memory_space<vmem>>, vector<16x256xf32>
      %29 = arith.addf %27, %28 : vector<16x256xf32>
      %c0_22 = arith.constant 0 : index
      %c0_23 = arith.constant 0 : index
      %30 = vector.load %arg8[%c0_22, %c0_23] : memref<1x256xf32, #tpu.memory_space<vmem>>, vector<1x256xf32>
      %31 = vector.broadcast %30 : vector<1x256xf32> to vector<16x256xf32>
      %32 = arith.addf %29, %31 : vector<16x256xf32>
      %c0_24 = arith.constant 0 : index
      %c0_25 = arith.constant 0 : index
      %33 = vector.load %arg9[%c0_24, %c0_25] : memref<16x256xf32, #tpu.memory_space<vmem>>, vector<16x256xf32>
      tpu.vector_store %arg9[%c0_24, %c0_25], %32 {strides = array<i32>} : memref<16x256xf32, #tpu.memory_space<vmem>>, vector<16x256xf32>,
    } else {
    }
    return
  }
  func.func @transform_0(%arg0: i32, %arg1: i32) -> (i32, i32) {
    %c0_i32 = arith.constant 0 : i32
    %c0_i32_0 = arith.constant 0 : i32
    return %arg0, %c0_i32 : i32, i32
  }
  func.func @transform_1(%arg0: i32, %arg1: i32) -> (i32, i32) {
    %c0_i32 = arith.constant 0 : i32
    %c0_i32_0 = arith.constant 0 : i32
    %c0_i32_1 = arith.constant 0 : i32
    return %c0_i32, %c0_i32_0 : i32, i32
  }
  func.func @transform_2(%arg0: i32, %arg1: i32) -> (i32, i32) {
    %c0_i32 = arith.constant 0 : i32
    %c0_i32_0 = arith.constant 0 : i32
    %c0_i32_1 = arith.constant 0 : i32
    return %c0_i32, %c0_i32_0 : i32, i32
  }
  func.func @transform_3(%arg0: i32, %arg1: i32) -> (i32, i32) {
    %c0_i32 = arith.constant 0 : i32
    %c0_i32_0 = arith.constant 0 : i32
    return %c0_i32, %arg1 : i32, i32
  }
  func.func @transform_4(%arg0: i32, %arg1: i32) -> (i32, i32) {
    %c0_i32 = arith.constant 0 : i32
    %c0_i32_0 = arith.constant 0 : i32
    return %c0_i32, %arg1 : i32, i32
  }
  func.func @transform_5(%arg0: i32, %arg1: i32) -> (i32, i32) {
    %c0_i32 = arith.constant 0 : i32
    %c0_i32_0 = arith.constant 0 : i32
    return %arg1, %c0_i32 : i32, i32
  }
  func.func @transform_6(%arg0: i32, %arg1: i32) -> (i32, i32) {
    %c0_i32 = arith.constant 0 : i32
    %c0_i32_0 = arith.constant 0 : i32
    %c0_i32_1 = arith.constant 0 : i32
    return %c0_i32, %c0_i32_0 : i32, i32
  }
  func.func @transform_7(%arg0: i32, %arg1: i32) -> (i32, i32) {
    %c0_i32 = arith.constant 0 : i32
    %c0_i32_0 = arith.constant 0 : i32
    return %arg0, %c0_i32 : i32, i32
  }
}

</mosaic_0001>

<bundles_post_ra>
// kernel: tpu_custom_call.1
= control target key start
LH: loop header
LB: loop body
LE: loop exit
PB: predicated region body
PF: predicated region fallthrough
CT: control target
= control target key end

     0   :  { %12 = vsyncpa [#allocation5], 0  ;;  %s1157_s0 = inlined_call_operand.hbm [shape: f32[16,256], index: 0, kind: input, shape index: {}]   ;;  %s1158_s1 = inlined_call_operand.hbm [shape: f32[1,256], index: 1, kind: input, shape index: {}]   ;;  %s1159_s2 = inlined_call_operand.vmem [shape: f32[1,256], index: 2, kind: input, shape index: {}]   ;;  %s1160_s3 = inlined_call_operand.hbm [shape: bf16[256,256], index: 3, kind: input, shape index: {}]   ;;  %s1161_s4 = inlined_call_operand.vmem [shape: f32[1,256], index: 4, kind: input, shape index: {}]   ;;  %s1162_s5 = inlined_call_operand.hbm [shape: bf16[256,256], index: 5, kind: input, shape index: {}]   ;;  %s1163_s6 = inlined_call_operand.vmem [shape: f32[1,256], index: 6, kind: input, shape index: {}]   ;;  %s1164_s7 = inlined_call_operand.hbm [shape: f32[16,256], index: 7, kind: output, shape index: {}]  }
   0x1   :  { %13 = vsyncpa [#allocation8], 0 }
   0x2   :  { %14 = vsyncpa [#allocation11], 0 }
   0x3   :  { %15 = vsyncpa [#allocation6], 0  ;;  %s1038_s24 = smov [#allocation7]   ;;  %s1039_s26 = smov [#allocation4]  }
   0x4   :  { %s34_s25 = sshll.u32 %s1038_s24, 4  ;;  %s21_s27 = sshll.u32 %s1039_s26, 4  ;;  %s35_s25 = int_to_ptr.vmem [resolvable:$true] %s34_s25  ;;  %s22_s27 = int_to_ptr.vmem [resolvable:$true] %s21_s27 }
   0x5   :  { %s938_s28 = scalar_lea.vmem %s35_s25, 32  ;;  %p943_p1 = scmp.lt.s32.totalorder %s35_s25, %s35_s25 }
   0x6   :  { %p939_p0 = scmp.ne.s32.totalorder %s35_s25, %s938_s28  ;;  %p944_p2 = scmp.lt.s32.totalorder %s938_s28, %s938_s28 }
   0x8   :  { %p945_p3 = por %p944_p2, %p943_p1 }
   0xa   :  { %p946_p4 = pnand %p945_p3, %p939_p0 }
   0xc   :  { %949 = shalt.err (!%p946_p4)
}
   0xd   :  { %37 = dma.hbm_to_vmem [thread:$0]  %s1158_s1, 32, %s35_s25, [#allocation8]  }
   0xe   :  { %s958_s8 = scalar_lea.vmem %s22_s27, 512  ;;  %p963_p6 = scmp.lt.s32.totalorder %s22_s27, %s22_s27 }
   0xf   :  { %p959_p5 = scmp.ne.s32.totalorder %s22_s27, %s958_s8  ;;  %p964_p7 = scmp.lt.s32.totalorder %s958_s8, %s958_s8 }
  0x11   :  { %p965_p8 = por %p964_p7, %p963_p6 }
  0x13   :  { %p966_p9 = pnand %p965_p8, %p959_p5 }
  0x15   :  { %969 = shalt.err (!%p966_p9)
}
  0x16   :  { %s1040_s9 = smov 256   ;;  %s1041_s10 = smov 16  }
  0x17   :  { %27 = dma.hbm_to_vmem [thread:$0]  %s1157_s0, 512, %s22_s27, [#allocation5], %s1040_s9, %s1040_s9, %s1041_s10  }
  0x18   :  { %s1042_s13 = smov [#allocation9]  }
  0x19   :  { %s45_s14 = sshll.u32 %s1042_s13, 4  ;;  %s46_s14 = int_to_ptr.vmem [resolvable:$true] %s45_s14 }
  0x1a   :  { %s978_s1 = scalar_lea.vmem %s46_s14, 4096  ;;  %p983_p11 = scmp.lt.s32.totalorder %s46_s14, %s46_s14 }
  0x1b   :  { %p979_p10 = scmp.ne.s32.totalorder %s46_s14, %s978_s1  ;;  %p984_p12 = scmp.lt.s32.totalorder %s978_s1, %s978_s1 }
  0x1d   :  { %p985_p13 = por %p984_p12, %p983_p11 }
  0x1f   :  { %p986_p0 = pnand %p985_p13, %p979_p10 }
  0x21   :  { %989 = shalt.err (!%p986_p0)
}
  0x22   :  { %s1043_s15 = smov 128   ;;  %s1044_s16 = smov 8  }
  0x23   :  { %51 = dma.hbm_to_vmem [thread:$0]  %s1160_s3, 4096, %s46_s14, [#allocation8], %s1043_s15, %s1043_s15, %s1044_s16  }
  0x24   :  { %s1045_s19 = smov [#allocation10]  }
  0x25   :  { %s59_s20 = sshll.u32 %s1045_s19, 4  ;;  %s60_s20 = int_to_ptr.vmem [resolvable:$true] %s59_s20 }
  0x26   :  { %s998_s0 = scalar_lea.vmem %s60_s20, 4096  ;;  %p1003_p2 = scmp.lt.s32.totalorder %s60_s20, %s60_s20 }
  0x27   :  { %p999_p1 = scmp.ne.s32.totalorder %s60_s20, %s998_s0  ;;  %p1004_p3 = scmp.lt.s32.totalorder %s998_s0, %s998_s0 }
  0x29   :  { %p1005_p4 = por %p1004_p3, %p1003_p2 }
  0x2b   :  { %p1006_p5 = pnand %p1005_p4, %p999_p1 }
  0x2d   :  { %1009 = shalt.err (!%p1006_p5)
}
  0x2e   :  { %65 = dma.hbm_to_vmem [thread:$0]  %s1162_s5, 4096, %s60_s20, [#allocation11], %s1043_s15, %s1043_s15, %s1044_s16  }
  0x2f   :  { %1030 = dma.done.wait [#allocation5], 512  }
  0x30   :  { %1031 = vsyncadd [#allocation5], 4294966784 }
  0x31   :  { %1032 = dma.done.wait [#allocation8], 4128  }
  0x32   :  { %1033 = vsyncadd [#allocation8], 4294963168 }
  0x33   :  { %1034 = dma.done.wait [#allocation11], 4096  }
  0x34   :  { %1035 = vsyncadd [#allocation11], 4294963200  ;;  %v84_v0 = vld [vmem:[#allocation4] sm:$0xff]  ;;  %v85_v1 = vld [vmem:[#allocation4 + $0x8] sm:$0xff]  ;;  %v100_v23 = vlaneseq  ;;  %s1046_s25 = smov [#allocation12]  }
  0x35   :  { %v86_v2 = vld [vmem:[#allocation4 + $0x10] sm:$0xff]  ;;  %v88_v3 = vadd.f32 %v85_v1, %v84_v0  ;;  %v87_v4 = vld [vmem:[#allocation4 + $0x18] sm:$0xff]  ;;  %v827_v9 = vld [vmem:[#allocation9 + $0x60] ss:$8 sps:$4 sm:$0xff]   ;;  %s735_s26 = sshll.u32 %s1046_s25, 4  ;;  %s736_s26 = int_to_ptr.vmem [resolvable:$true] %s735_s26 }
  0x36   :  { %v91_v5 = vadd.f32 %v87_v4, %v86_v2  ;;  %v822_v6 = vld [vmem:[#allocation9 + $0x74] ss:$8 sps:$4 sm:$0xff]   ;;  %v824_v7 = vld [vmem:[#allocation9 + $0x70] ss:$8 sps:$4 sm:$0xff]   ;;  %v825_v8 = vld [vmem:[#allocation9 + $0x64] ss:$8 sps:$4 sm:$0xff]   ;;  %p1015_p7 = scmp.lt.s32.totalorder %s736_s26, %s736_s26 }
  0x37   :  { %89 = vadd.xlane.f32.xlu0 %v88_v3  ;;  %383 = vmatprep.subr.bf16.mxu0 %v822_v6  ;;  %v828_v10 = vld [vmem:[#allocation9 + $0x54] ss:$8 sps:$4 sm:$0xff]   ;;  %v830_v11 = vld [vmem:[#allocation9 + $0x50] ss:$8 sps:$4 sm:$0xff]   ;;  %v831_v12 = vld [vmem:[#allocation9 + $0x44] ss:$8 sps:$4 sm:$0xff]  }
  0x38   :  { %384 = vmatpush1.bf16.msra.mxu0 %v824_v7  ;;  %v833_v13 = vld [vmem:[#allocation9 + $0x40] ss:$8 sps:$4 sm:$0xff]   ;;  %v834_v14 = vld [vmem:[#allocation9 + $0x34] ss:$8 sps:$4 sm:$0xff]   ;;  %v836_v15 = vld [vmem:[#allocation9 + $0x30] ss:$8 sps:$4 sm:$0xff]  }
  0x39   :  { %385 = vmatprep.subr.bf16.mxu0 %v825_v8  ;;  %v837_v16 = vld [vmem:[#allocation9 + $0x24] ss:$8 sps:$4 sm:$0xff]   ;;  %v839_v17 = vld [vmem:[#allocation9 + $0x20] ss:$8 sps:$4 sm:$0xff]   ;;  %v840_v18 = vld [vmem:[#allocation9 + $0x14] ss:$8 sps:$4 sm:$0xff]  }
  0x3a   :  { %v842_v19 = vld [vmem:[#allocation9 + $0x10] ss:$8 sps:$4 sm:$0xff]   ;;  %v843_v20 = vld [vmem:[#allocation9 + $0x4] ss:$8 sps:$4 sm:$0xff]   ;;  %v845_v21 = vld [vmem:[#allocation9] ss:$8 sps:$4 sm:$0xff]  }
  0x3b   :  { %92 = vadd.xlane.f32.xlu0 %v91_v5  ;;  %v846_v22 = vld [vmem:[#allocation9 + $0xf4] ss:$8 sps:$4 sm:$0xff]   ;;  %v101_v24 = vand.u32 127, %v100_v23  ;;  %v848_v35 = vld [vmem:[#allocation9 + $0xf0] ss:$8 sps:$4 sm:$0xff]   ;;  %v136_v8 = vshrl.u32 %v100_v23, 7 }
  0x3c   :  { %386 = vmatpush1.bf16.msra.mxu0 %v827_v9  ;;  %v849_v36 = vld [vmem:[#allocation9 + $0xe4] ss:$8 sps:$4 sm:$0xff]   ;;  %v851_v37 = vld [vmem:[#allocation9 + $0xe0] ss:$8 sps:$4 sm:$0xff]   ;;  %v852_v38 = vld [vmem:[#allocation9 + $0xd4] ss:$8 sps:$4 sm:$0xff]  }
  0x3d   :  { %387 = vmatprep.subr.bf16.mxu0 %v828_v10  ;;  %vm103_vm0 = vcmp.lt.s32.totalorder %v101_v24, 32  ;;  %v854_v39 = vld [vmem:[#allocation9 + $0xd0] ss:$8 sps:$4 sm:$0xff]   ;;  %v855_v40 = vld [vmem:[#allocation9 + $0xc4] ss:$8 sps:$4 sm:$0xff]   ;;  %v1112_v9 = vsub.s32 0, %v136_v8 }
  0x3e   :  { %v857_v41 = vld [vmem:[#allocation9 + $0xc0] ss:$8 sps:$4 sm:$0xff]   ;;  %v858_v42 = vld [vmem:[#allocation9 + $0xb4] ss:$8 sps:$4 sm:$0xff]   ;;  %v860_v43 = vld [vmem:[#allocation9 + $0xb0] ss:$8 sps:$4 sm:$0xff]  }
  0x3f   :  { %v861_v44 = vld [vmem:[#allocation9 + $0xa4] ss:$8 sps:$4 sm:$0xff]   ;;  %v863_v45 = vld [vmem:[#allocation9 + $0xa0] ss:$8 sps:$4 sm:$0xff]   ;;  %v864_v46 = vld [vmem:[#allocation9 + $0x94] ss:$8 sps:$4 sm:$0xff]  }
  0x40   :  { %388 = vmatpush1.bf16.msra.mxu0 %v830_v11  ;;  %v866_v47 = vld [vmem:[#allocation9 + $0x90] ss:$8 sps:$4 sm:$0xff]   ;;  %v867_v48 = vld [vmem:[#allocation9 + $0x84] ss:$8 sps:$4 sm:$0xff]   ;;  %v869_v49 = vld [vmem:[#allocation9 + $0x80] ss:$8 sps:$4 sm:$0xff]  }
  0x41   :  { %389 = vmatprep.subr.bf16.mxu0 %v831_v12  ;;  %v870_v50 = vld [vmem:[#allocation10 + $0x74] ss:$8 sps:$4 sm:$0xff]   ;;  %v872_v51 = vld [vmem:[#allocation10 + $0x70] ss:$8 sps:$4 sm:$0xff]   ;;  %v873_v52 = vld [vmem:[#allocation10 + $0x64] ss:$8 sps:$4 sm:$0xff]  }
  0x42   :  { %644 = vmatprep.subr.bf16.mxu1 %v870_v50  ;;  %v875_v53 = vld [vmem:[#allocation10 + $0x60] ss:$8 sps:$4 sm:$0xff]   ;;  %v876_v54 = vld [vmem:[#allocation10 + $0x54] ss:$8 sps:$4 sm:$0xff]   ;;  %v878_v55 = vld [vmem:[#allocation10 + $0x50] ss:$8 sps:$4 sm:$0xff]  }
  0x43   :  { %645 = vmatpush1.bf16.msra.mxu1 %v872_v51  ;;  %v879_v56 = vld [vmem:[#allocation10 + $0x44] ss:$8 sps:$4 sm:$0xff]   ;;  %v881_v57 = vld [vmem:[#allocation10 + $0x40] ss:$8 sps:$4 sm:$0xff]   ;;  %v882_v58 = vld [vmem:[#allocation10 + $0x34] ss:$8 sps:$4 sm:$0xff]  }
  0x44   :  { %390 = vmatpush1.bf16.msra.mxu0 %v833_v13  ;;  %646 = vmatprep.subr.bf16.mxu1 %v873_v52  ;;  %v884_v59 = vld [vmem:[#allocation10 + $0x30] ss:$8 sps:$4 sm:$0xff]   ;;  %v885_v60 = vld [vmem:[#allocation10 + $0x24] ss:$8 sps:$4 sm:$0xff]   ;;  %v887_v61 = vld [vmem:[#allocation10 + $0x20] ss:$8 sps:$4 sm:$0xff]  }
  0x45   :  { %391 = vmatprep.subr.bf16.mxu0 %v834_v14  ;;  %v888_v62 = vld [vmem:[#allocation10 + $0x14] ss:$8 sps:$4 sm:$0xff]   ;;  %v890_v63 = vld [vmem:[#allocation10 + $0x10] ss:$8 sps:$4 sm:$0xff]   ;;  %v893_v1 = vld [vmem:[#allocation10] ss:$8 sps:$4 sm:$0xff]  }
  0x46   :  { %v1114_v10 = vsub.s32 1, %v136_v8  ;;  %v133_v11 = vld [vmem:[#allocation7] sm:$0x3] }
  0x47   :  { %647 = vmatpush1.bf16.msra.mxu1 %v875_v53  ;;  %v138_v14 = vrot.slane %v133_v11, %v1112_v9 }
  0x48   :  { %392 = vmatpush1.bf16.msra.mxu0 %v836_v15  ;;  %648 = vmatprep.subr.bf16.mxu1 %v876_v54  ;;  %v142_v15 = vrot.slane %v133_v11, %v1114_v10 }
  0x49   :  { %393 = vmatprep.subr.bf16.mxu0 %v837_v16  ;;  %v149_v16 = vld [vmem:[%s1159_s2] sm:$0x3] }
  0x4b   :  { %649 = vmatpush1.bf16.msra.mxu1 %v878_v55 }
  0x4c   :  { %394 = vmatpush1.bf16.msra.mxu0 %v839_v17  ;;  %650 = vmatprep.subr.bf16.mxu1 %v879_v56 }
  0x4d   :  { %395 = vmatprep.subr.bf16.mxu0 %v840_v18 }
  0x4f   :  { %651 = vmatpush1.bf16.msra.mxu1 %v881_v57 }
  0x50   :  { %396 = vmatpush1.bf16.msra.mxu0 %v842_v19  ;;  %652 = vmatprep.subr.bf16.mxu1 %v882_v58  ;;  %v154_v19 = vrot.slane %v149_v16, %v1112_v9 }
  0x51   :  { %397 = vmatprep.subr.bf16.mxu0 %v843_v20  ;;  %v158_v20 = vrot.slane %v149_v16, %v1114_v10 }
  0x53   :  { %653 = vmatpush1.bf16.msra.mxu1 %v884_v59 }
  0x54   :  { %398 = vmatpush1.bf16.msra.mxu0 %v845_v21  ;;  %654 = vmatprep.subr.bf16.mxu1 %v885_v60 }
  0x55   :  { %399 = vmatprep.subr.bf16.mxu0 %v846_v22 }
  0x57   :  { %655 = vmatpush1.bf16.msra.mxu1 %v887_v61 }
  0x58   :  { %400 = vmatpush2.bf16.msra.mxu0 %v848_v35  ;;  %656 = vmatprep.subr.bf16.mxu1 %v888_v62  ;;  %v897_v35 = vld [vmem:[#allocation10 + $0xe4] ss:$8 sps:$4 sm:$0xff]  }
  0x59   :  { %401 = vmatprep.subr.bf16.mxu0 %v849_v36  ;;  %v899_v36 = vld [vmem:[#allocation10 + $0xe0] ss:$8 sps:$4 sm:$0xff]  }
  0x5b   :  { %657 = vmatpush1.bf16.msra.mxu1 %v890_v63 }
  0x5c   :  { %402 = vmatpush2.bf16.msra.mxu0 %v851_v37  ;;  %v900_v37 = vld [vmem:[#allocation10 + $0xd4] ss:$8 sps:$4 sm:$0xff]  }
  0x5d   :  { %403 = vmatprep.subr.bf16.mxu0 %v852_v38  ;;  %v902_v38 = vld [vmem:[#allocation10 + $0xd0] ss:$8 sps:$4 sm:$0xff]  }
  0x60   :  { %404 = vmatpush2.bf16.msra.mxu0 %v854_v39  ;;  %v903_v39 = vld [vmem:[#allocation10 + $0xc4] ss:$8 sps:$4 sm:$0xff]  }
  0x61   :  { %405 = vmatprep.subr.bf16.mxu0 %v855_v40  ;;  %v905_v40 = vld [vmem:[#allocation10 + $0xc0] ss:$8 sps:$4 sm:$0xff]  }
  0x64   :  { %406 = vmatpush2.bf16.msra.mxu0 %v857_v41  ;;  %v906_v41 = vld [vmem:[#allocation10 + $0xb4] ss:$8 sps:$4 sm:$0xff]  }
  0x65   :  { %407 = vmatprep.subr.bf16.mxu0 %v858_v42  ;;  %v908_v42 = vld [vmem:[#allocation10 + $0xb0] ss:$8 sps:$4 sm:$0xff]  }
  0x68   :  { %408 = vmatpush2.bf16.msra.mxu0 %v860_v43  ;;  %v909_v43 = vld [vmem:[#allocation10 + $0xa4] ss:$8 sps:$4 sm:$0xff]  }
  0x69   :  { %409 = vmatprep.subr.bf16.mxu0 %v861_v44  ;;  %v911_v44 = vld [vmem:[#allocation10 + $0xa0] ss:$8 sps:$4 sm:$0xff]  }
  0x6c   :  { %410 = vmatpush2.bf16.msra.mxu0 %v863_v45  ;;  %v912_v45 = vld [vmem:[#allocation10 + $0x94] ss:$8 sps:$4 sm:$0xff]  }
  0x6d   :  { %411 = vmatprep.subr.bf16.mxu0 %v864_v46  ;;  %v914_v46 = vld [vmem:[#allocation10 + $0x90] ss:$8 sps:$4 sm:$0xff]  }
  0x70   :  { %412 = vmatpush2.bf16.msra.mxu0 %v866_v47  ;;  %v915_v47 = vld [vmem:[#allocation10 + $0x84] ss:$8 sps:$4 sm:$0xff]  }
  0x71   :  { %413 = vmatprep.subr.bf16.mxu0 %v867_v48  ;;  %v917_v48 = vld [vmem:[#allocation10 + $0x80] ss:$8 sps:$4 sm:$0xff]  }
  0x74   :  { %414 = vmatpush2.bf16.msra.mxu0 %v869_v49  ;;  %v211_v49 = vld [vmem:[%s1161_s4] sm:$0x3] }
  0x75   :  { %v216_v50 = vrot.slane %v211_v49, %v1112_v9  ;;  %v220_v51 = vrot.slane %v211_v49, %v1114_v10 }
  0xc0   :  { %v90_v25 = vpop.xlane.xlu0 %89 }
  0xc1   :  { %v94_v26 = vmul.f32 0.03125, %v90_v25 }
  0xc3   :  { %v96_v27 = vsub.f32 %v84_v0, %v94_v26  ;;  %v891_v0 = vld [vmem:[#allocation10 + $0x4] ss:$8 sps:$4 sm:$0xff]  }
  0xc4   :  { %v93_v28 = vpop.xlane.xlu0 %92  ;;  %658 = vmatprep.subr.bf16.mxu1 %v891_v0 }
  0xc5   :  { %v95_v29 = vmul.f32 0.03125, %v93_v28  ;;  %v1103_v30 = vsel %vm103_vm0, %v96_v27, 0.0  ;;  %659 = vmatpush1.bf16.msra.mxu1 %v893_v1 }
  0xc6   :  { %v113_v31 = vmul.f32 %v1103_v30, %v1103_v30 }
  0xc7   :  { %v98_v32 = vsub.f32 %v86_v2, %v95_v29 }
  0xc8   :  { %118 = vadd.xlane.f32.xlu1 %v113_v31 }
  0xc9   :  { %v1107_v33 = vsel %vm103_vm0, %v98_v32, 0.0 }
  0xca   :  { %v115_v34 = vmul.f32 %v1107_v33, %v1107_v33 }
  0xcc   :  { %121 = vadd.xlane.f32.xlu1 %v115_v34  ;;  %v896_v34 = vld [vmem:[#allocation10 + $0xf0] ss:$8 sps:$4 sm:$0xff]  }
 0x151   :  { %v119_v2 = vpop.xlane.xlu1 %118 }
 0x152   :  { %v123_v3 = vmul.f32 0.03125, %v119_v2 }
 0x154   :  { %v125_v4 = vadd.f32 1e-05, %v123_v3 }
 0x155   :  { %v122_v5 = vpop.xlane.xlu1 %121 }
 0x156   :  { %918 = vrsqrt.f32 %v125_v4  ;;  %v124_v6 = vmul.f32 0.03125, %v122_v5 }
 0x158   :  { %v126_v7 = vadd.f32 1e-05, %v124_v6 }
 0x15a   :  { %920 = vrsqrt.f32 %v126_v7 }
 0x163   :  { %v919_v12 = vpop.eup %918 }
 0x164   :  { %v130_v13 = vmul.f32 0.0, %v919_v12  ;;  %v129_v17 = vmul.f32 %v919_v12, %v1103_v30 }
 0x166   :  { %v146_v22 = vmul.f32 %v142_v15, %v130_v13  ;;  %v145_v24 = vmul.f32 %v138_v14, %v129_v17 }
 0x167   :  { %v921_v18 = vpop.eup %920 }
 0x168   :  { %v132_v21 = vmul.f32 0.0, %v921_v18  ;;  %v131_v23 = vmul.f32 %v921_v18, %v1107_v33  ;;  %v1125_v27 = vadd.f32 %v158_v20, %v146_v22  ;;  %v1129_v29 = vadd.f32 %v154_v19, %v145_v24  ;;  %v894_v33 = vld [vmem:[#allocation10 + $0xf4] ss:$8 sps:$4 sm:$0xff]  }
 0x169   :  { %660 = vmatprep.subr.bf16.mxu1 %v894_v33 }
 0x16a   :  { %v148_v25 = vmul.f32 %v142_v15, %v132_v21  ;;  %v147_v26 = vmul.f32 %v138_v14, %v131_v23  ;;  %661 = vmatpush2.bf16.msra.mxu1 %v896_v34 }
 0x16b   :  { %662 = vmatprep.subr.bf16.mxu1 %v897_v35 }
 0x16c   :  { %v1127_v28 = vadd.f32 %v158_v20, %v148_v25  ;;  %v1131_v31 = vadd.f32 %v154_v19, %v147_v26  ;;  %v710_v20 = vld [vmem:[%s1163_s6] sm:$0x3]  ;;  %s1010_s6 = scalar_lea.vmem %s736_s26, 512 }
 0x16d   :  { %v715_v21 = vrot.slane %v710_v20, %v1112_v9  ;;  %v719_v24 = vrot.slane %v710_v20, %v1114_v10  ;;  %p1011_p6 = scmp.ne.s32.totalorder %s736_s26, %s1010_s6  ;;  %p1016_p8 = scmp.lt.s32.totalorder %s1010_s6, %s1010_s6 }
 0x16e   :  { %v178_v30 = vpack.c.bf16 %v1127_v28, %v1125_v27  ;;  %v177_v32 = vpack.c.bf16 %v1131_v31, %v1129_v29  ;;  %663 = vmatpush2.bf16.msra.mxu1 %v899_v36 }
 0x16f   :  { %664 = vmatprep.subr.bf16.mxu1 %v900_v37  ;;  %p1017_p9 = por %p1016_p8, %p1015_p7 }
 0x170   :  { %415 = vmatprep.mubr.bf16.mxu0 %v178_v30 }
 0x171   :  { %416 = vmatmul.mubr.bf16.vlgmr.msra.gmra.mxu0 %v177_v32  ;;  %p1018_p10 = pnand %p1017_p9, %p1011_p6 }
 0x172   :  { %665 = vmatpush2.bf16.msra.mxu1 %v902_v38 }
 0x173   :  { %666 = vmatprep.subr.bf16.mxu1 %v903_v39 }
 0x176   :  { %667 = vmatpush2.bf16.msra.mxu1 %v905_v40 }
 0x177   :  { %668 = vmatprep.subr.bf16.mxu1 %v906_v41 }
 0x17a   :  { %669 = vmatpush2.bf16.msra.mxu1 %v908_v42 }
 0x17b   :  { %670 = vmatprep.subr.bf16.mxu1 %v909_v43 }
 0x17e   :  { %671 = vmatpush2.bf16.msra.mxu1 %v911_v44 }
 0x17f   :  { %672 = vmatprep.subr.bf16.mxu1 %v912_v45 }
 0x182   :  { %673 = vmatpush2.bf16.msra.mxu1 %v914_v46 }
 0x183   :  { %674 = vmatprep.subr.bf16.mxu1 %v915_v47 }
 0x186   :  { %675 = vmatpush2.bf16.msra.mxu1 %v917_v48 }
 0x231   :  { %v417_v52 = vpop.f32.mrf.mxu0 }
 0x232   :  { %v418_v53 = vadd.f32 %v417_v52, %v216_v50 }
 0x233   :  { %v419_v54 = vpop.f32.mrf.mxu0 }
 0x234   :  { %v420_v55 = vadd.f32 %v419_v54, %v220_v51  ;;  %v430_v56 = vmul.f32 0.70710677, %v418_v53  ;;  %v426_v13 = vmul.f32 0.5, %v418_v53 }
 0x235   :  { %v421_v57 = vpop.f32.mrf.mxu0 }
 0x236   :  { %v431_v58 = vmul.f32 0.70710677, %v420_v55  ;;  %v422_v59 = vadd.f32 %v421_v57, %v216_v50  ;;  %v427_v8 = vmul.f32 0.5, %v420_v55 }
 0x237   :  { %v423_v60 = vpop.f32.mrf.mxu0 }
 0x238   :  { %922 = verf.f32 %v431_v58  ;;  %v432_v61 = vmul.f32 0.70710677, %v422_v59  ;;  %v424_v62 = vadd.f32 %v423_v60, %v220_v51  ;;  %v428_v7 = vmul.f32 0.5, %v422_v59 }
 0x239   :  { %924 = verf.f32 %v430_v56 }
 0x23a   :  { %926 = verf.f32 %v432_v61  ;;  %v433_v63 = vmul.f32 0.70710677, %v424_v62  ;;  %v429_v11 = vmul.f32 0.5, %v424_v62 }
 0x23c   :  { %928 = verf.f32 %v433_v63 }
 0x245   :  { %v923_v0 = vpop.eup %922 }
 0x246   :  { %v925_v1 = vpop.eup %924  ;;  %v439_v4 = vadd.f32 1.0, %v923_v0 }
 0x247   :  { %v927_v2 = vpop.eup %926  ;;  %v438_v6 = vadd.f32 1.0, %v925_v1 }
 0x248   :  { %v440_v3 = vadd.f32 1.0, %v927_v2  ;;  %v443_v15 = vmul.f32 %v439_v4, %v427_v8 }
 0x249   :  { %v929_v5 = vpop.eup %928  ;;  %v442_v17 = vmul.f32 %v438_v6, %v426_v13 }
 0x24a   :  { %v441_v12 = vadd.f32 1.0, %v929_v5  ;;  %v444_v14 = vmul.f32 %v440_v3, %v428_v7 }
 0x24c   :  { %v445_v16 = vmul.f32 %v441_v12, %v429_v11  ;;  %v450_v19 = vpack.c.bf16 %v444_v14, %v442_v17 }
 0x24e   :  { %v451_v18 = vpack.c.bf16 %v445_v16, %v443_v15 }
 0x250   :  { %676 = vmatprep.mubr.bf16.mxu1 %v451_v18 }
 0x251   :  { %677 = vmatmul.mubr.bf16.vlgmr.msra.gmra.mxu1 %v450_v19 }
 0x311   :  { %v678_v22 = vpop.f32.mrf.mxu1 }
 0x312   :  { %v706_v23 = vadd.f32 %v678_v22, %v1129_v29 }
 0x313   :  { %v680_v25 = vpop.f32.mrf.mxu1 }
 0x314   :  { %v722_v26 = vadd.f32 %v715_v21, %v706_v23  ;;  %v707_v30 = vadd.f32 %v680_v25, %v1125_v27 }
 0x315   :  { %v682_v32 = vpop.f32.mrf.mxu1 }
 0x316   :  { %726 = vst [vmem:[#allocation12] sm:$0xff] %v722_v26  ;;  %v723_v33 = vadd.f32 %v719_v24, %v707_v30  ;;  %v708_v34 = vadd.f32 %v682_v32, %v1131_v31 }
 0x317   :  { %v684_v35 = vpop.f32.mrf.mxu1 }
 0x318   :  { %727 = vst [vmem:[#allocation12 + $0x8] sm:$0xff] %v723_v33  ;;  %v724_v36 = vadd.f32 %v715_v21, %v708_v34  ;;  %v709_v9 = vadd.f32 %v684_v35, %v1127_v28 }
 0x31a   :  { %728 = vst [vmem:[#allocation12 + $0x10] sm:$0xff] %v724_v36  ;;  %v725_v29 = vadd.f32 %v719_v24, %v709_v9 }
 0x31c   :  { %729 = vst [vmem:[#allocation12 + $0x18] sm:$0xff] %v725_v29 }
 0x31d   :  { %1021 = shalt.err (!%p1018_p10)
}
 0x31e   :  { %741 = dma.vmem_to_hbm [thread:$0]  %s736_s26, 512, %s1164_s7, [#allocation6], %s1040_s9, %s1040_s9, %s1041_s10  }
 0x31f   :  { %1036 = dma.done.wait [#allocation6], 512  }
 0x320   :  { %1037 = vsyncadd [#allocation6], 4294966784 }
 0x321   :  { %745 = vsyncpa [#allocation5], 1 }
 0x322   :  { %746 = vsyncpa [#allocation8], 1 }
 0x323   :  { %747 = vsyncpa [#allocation11], 1 }
 0x324   :  { %748 = vsyncpa [#allocation6], 1 }

</bundles_post_ra>
